<compile_context>
chip_gen: v5e
topology: v5e:2x2
jax: 0.10.0
libtpu: 0.0.40
codegen_flags: <defaults>
</compile_context>

<pallas_src>
import functools

import jax
import jax.numpy as jnp
from jax.experimental import pallas as pl
from jax.experimental.pallas import tpu as pltpu


def _round_up(n, m):
    return ((n + m - 1) // m) * m


def _cat2vec_kernel(x_ref, *refs, layer_meta, n_groups):
    """Fused MLP body for one batch tile.

    refs = (w_group_0, ..., w_group_{G-1}, bias_ref, out_ref).
    layer_meta: per layer (group_idx, k_offset, k_size, n_padded, bias_offset, relu).
    """
    w_refs = refs[:n_groups]
    b_ref = refs[n_groups]
    o_ref = refs[n_groups + 1]

    h = x_ref[...].astype(jnp.bfloat16)              # (TB, K0) bf16
    for (g, k_off, k_sz, n_pad, b_off, relu) in layer_meta:
        w = w_refs[g][k_off:k_off + k_sz, :]         # (K_i, N_i) bf16, static slice
        acc = jnp.dot(h, w, preferred_element_type=jnp.float32)
        acc = acc + b_ref[0:1, b_off:b_off + n_pad]
        h = jnp.maximum(acc, 0.0).astype(jnp.bfloat16) if relu else acc
    o_ref[...] = h.astype(o_ref.dtype)


def _fused_pallas(x, weight_groups, bias_packed, *, tb, n_out_pad, layer_meta):
    """One pallas_call over a 1-D batch grid; weights resident across steps."""
    b, k_in = x.shape
    n_groups = len(weight_groups)
    grid = (pl.cdiv(b, tb),)

    kernel = functools.partial(_cat2vec_kernel, layer_meta=layer_meta,
                               n_groups=n_groups)

    in_specs = [pl.BlockSpec((tb, k_in), lambda i: (i, 0))]
    for wg in weight_groups:                          # whole-array resident
        in_specs.append(pl.BlockSpec(wg.shape, lambda i: (0, 0)))
    in_specs.append(pl.BlockSpec(bias_packed.shape, lambda i: (0, 0)))
    out_specs = pl.BlockSpec((tb, n_out_pad), lambda i: (i, 0))

    flops = 2 * b * sum(k * n for (_, _, k, n, _, _) in layer_meta)
    bytes_accessed = (
        int(x.size) * x.dtype.itemsize
        + sum(int(w.size) * w.dtype.itemsize for w in weight_groups)
        + int(bias_packed.size) * bias_packed.dtype.itemsize
        + b * n_out_pad * 4)

    return pl.pallas_call(
        kernel,
        out_shape=jax.ShapeDtypeStruct((b, n_out_pad), jnp.float32),
        grid=grid,
        in_specs=in_specs,
        out_specs=out_specs,
        compiler_params=pltpu.CompilerParams(
            dimension_semantics=("parallel",),       # megacore batch sharding
            vmem_limit_bytes=32 * 1024 * 1024),
        cost_estimate=pl.CostEstimate(flops=int(flops), transcendentals=0,
                                      bytes_accessed=int(bytes_accessed)),
    )(x, *weight_groups, bias_packed)


@functools.partial(jax.jit,
                   static_argnames=("layer_meta", "n_out_pad", "out_features"))
def cat2vec_forward(x, weight_groups, bias_packed, *, layer_meta, n_out_pad,
                    out_features):
    if x.ndim > 2:
        x = x.reshape(x.shape[0], -1)                # NCHW -> (B, C*H*W)
    b = x.shape[0]
    # Batch tile: multiple of 16 (bf16 sublane packing), capped at 128 so live
    # activations stay in vregs.  Partial trailing blocks are clipped by
    # Pallas, so no wrapper-side pad / batch slice is needed.
    tb = min(128, _round_up(max(b, 16), 16))
    out = _fused_pallas(x, weight_groups, bias_packed, tb=tb,
                        n_out_pad=n_out_pad, layer_meta=layer_meta)
    if out_features != n_out_pad:
        out = out[:, :out_features]                  # static lane-pad col slice
    return out


class Cat2VecPallas:
    """Cat2Vec: 5 fully-connected layers with ReLU between them (eval-mode)."""

    def __init__(self, input_size, hidden_sizes, output_size, key,
                 param_dtype=jnp.bfloat16):
        sizes = [input_size] + list(hidden_sizes) + [output_size]
        n_layers = len(sizes) - 1
        self.output_size = output_size

        # Lane-pad every layer's output width to a multiple of 128 (dense
        # unmasked stores / clean MXU tiles); the next layer's input rows are
        # zero-padded to match so the chain stays consistent.
        padded_out = [_round_up(s, 128) for s in sizes[1:]]
        padded_in = [sizes[0]] + padded_out[:-1]

        weights, biases = [], []
        for i in range(n_layers):
            key, kw, kb = jax.random.split(key, 3)
            in_f, out_f = sizes[i], sizes[i + 1]
            # CustomLinear uses torch.randn init; mimic with standard normal.
            w = jax.random.normal(kw, (out_f, in_f), dtype=jnp.float32)
            bvec = jax.random.normal(kb, (out_f,), dtype=jnp.float32)
            w_t = jnp.pad(w.T, ((0, padded_in[i] - in_f),
                                (0, padded_out[i] - out_f)))
            bias = jnp.pad(bvec, (0, padded_out[i] - out_f)).reshape(1, -1)
            weights.append(w_t.astype(param_dtype))
            biases.append(bias.astype(jnp.float32))

        # Pack: consecutive layers with the same padded output width share one
        # weight array (concatenated along K); all biases go into one row.
        groups, layer_meta = [], []
        cur_n, k_off, b_off = None, 0, 0
        for i in range(n_layers):
            n_pad, k_sz = padded_out[i], padded_in[i]
            if n_pad != cur_n:
                groups.append([weights[i]])
                cur_n, k_off = n_pad, 0
            else:
                groups[-1].append(weights[i])
            layer_meta.append((len(groups) - 1, k_off, k_sz, n_pad, b_off,
                               i < n_layers - 1))
            k_off += k_sz
            b_off += n_pad

        self.weight_groups = tuple(jnp.concatenate(g, axis=0) for g in groups)
        self.bias_packed = jnp.concatenate(biases, axis=1)
        self.layer_meta = tuple(layer_meta)
        self.n_out_pad = padded_out[-1]

    def __call__(self, x):
        return cat2vec_forward(x, self.weight_groups, self.bias_packed,
                               layer_meta=self.layer_meta,
                               n_out_pad=self.n_out_pad,
                               out_features=self.output_size)


def reference_forward(x, weight_groups, bias_packed, layer_meta, out_features):
    """Pure-JAX reference doing the same bf16-weight / f32-accumulate math."""
    if x.ndim > 2:
        x = x.reshape(x.shape[0], -1)
    h = x.astype(jnp.bfloat16)
    for (g, k_off, k_sz, n_pad, b_off, relu) in layer_meta:
        w = weight_groups[g][k_off:k_off + k_sz, :]
        acc = jnp.dot(h, w, preferred_element_type=jnp.float32)
        acc = acc + bias_packed[0:1, b_off:b_off + n_pad]
        h = jnp.maximum(acc, 0.0).astype(jnp.bfloat16) if relu else acc
    return h[:, :out_features]


if __name__ == "__main__":
    key = jax.random.PRNGKey(0)
    key, kx, kp, kx2 = jax.random.split(key, 4)

    # Small shapes consistent with the module: RGB "image" 3x16x16, batch=2.
    B, C, H, W = 2, 3, 16, 16
    input_size = C * H * W            # 768
    hidden_sizes = [256, 128, 128, 128]
    output_size = 64

    model = Cat2VecPallas(input_size, hidden_sizes, output_size, kp)

    # ---- tiny-batch path (single grid step with a partial block) ----
    x = jax.random.normal(kx, (B, C, H, W), dtype=jnp.float32)
    out = jax.block_until_ready(model(x))
    assert out.shape == (B, output_size)
    ref = reference_forward(x, model.weight_groups, model.bias_packed,
                            model.layer_meta, output_size)
    scale = jnp.max(jnp.abs(ref)) + 1e-6
    assert jnp.max(jnp.abs(out - ref)) / scale < 1e-2, "mismatch (B=2)"

    # ---- multi-tile path (2 grid steps incl. a partial trailing block) ----
    B2 = 197
    x2 = jax.random.normal(kx2, (B2, input_size), dtype=jnp.float32)
    out2 = jax.block_until_ready(model(x2))
    assert out2.shape == (B2, output_size)
    ref2 = reference_forward(x2, model.weight_groups, model.bias_packed,
                             model.layer_meta, output_size)
    scale2 = jnp.max(jnp.abs(ref2)) + 1e-6
    assert jnp.max(jnp.abs(out2 - ref2)) / scale2 < 1e-2, "mismatch (B=197)"

    print("KERNEL_OK")
</pallas_src>

<mosaic_0001>
module attributes {stable_mosaic.version = 11 : i64} {
  func.func @_cat2vec_kernel(%arg0: i32, %arg1: memref<16x768xf32, #tpu.memory_space<vmem>>, %arg2: memref<768x256xbf16, #tpu.memory_space<vmem>>, %arg3: memref<640x128xbf16, #tpu.memory_space<vmem>>, %arg4: memref<1x768xf32, #tpu.memory_space<vmem>>, %arg5: memref<16x128xf32, #tpu.memory_space<vmem>>) attributes {dimension_semantics = [#tpu.dimension_semantics<parallel>], iteration_bounds = array<i64: 1>, scalar_prefetch = 0 : i64, scratch_operands = 0 : i64, tpu.core_type = #tpu.core_type<tc>, window_params = [{transform_indices = @transform_0, window_bounds = array<i64: 16, 768>}, {pipeline_mode = #tpu.pipeline_mode<synchronous>, transform_indices = @transform_1, window_bounds = array<i64: 768, 256>}, {pipeline_mode = #tpu.pipeline_mode<synchronous>, transform_indices = @transform_2, window_bounds = array<i64: 640, 128>}, {pipeline_mode = #tpu.pipeline_mode<synchronous>, transform_indices = @transform_3, window_bounds = array<i64: 1, 768>}, {transform_indices = @transform_4, window_bounds = array<i64: 16, 128>}]} {
    %c0 = arith.constant 0 : index
    %c0_0 = arith.constant 0 : index
    %0 = vector.load %arg1[%c0, %c0_0] : memref<16x768xf32, #tpu.memory_space<vmem>>, vector<16x768xf32>
    %1 = arith.truncf %0 : vector<16x768xf32> to vector<16x768xbf16>
    %c0_1 = arith.constant 0 : index
    %c0_2 = arith.constant 0 : index
    %2 = vector.load %arg2[%c0_1, %c0_2] : memref<768x256xbf16, #tpu.memory_space<vmem>>, vector<768x256xbf16>
    %cst = arith.constant dense<0.000000e+00> : vector<16x256xf32>
    %3 = tpu.matmul %1, %2, %cst {dimension_numbers = #tpu.dot_dimension_numbers<[1], [0], [0], [1], [0, 0, 1, 1], [], []>} : vector<16x768xbf16>, vector<768x256xbf16>, vector<16x256xf32> -> vector<16x256xf32>
    %c0_3 = arith.constant 0 : index
    %c0_4 = arith.constant 0 : index
    %4 = vector.load %arg4[%c0_3, %c0_4] : memref<1x768xf32, #tpu.memory_space<vmem>>, vector<1x256xf32>
    %5 = vector.broadcast %4 : vector<1x256xf32> to vector<16x256xf32>
    %6 = arith.addf %3, %5 : vector<16x256xf32>
    %cst_5 = arith.constant 0.000000e+00 : f32
    %7 = vector.broadcast %cst_5 : f32 to vector<16x256xf32>
    %8 = arith.maximumf %6, %7 : vector<16x256xf32>
    %9 = arith.truncf %8 : vector<16x256xf32> to vector<16x256xbf16>
    %c0_6 = arith.constant 0 : index
    %c0_7 = arith.constant 0 : index
    %10 = vector.load %arg3[%c0_6, %c0_7] : memref<640x128xbf16, #tpu.memory_space<vmem>>, vector<256x128xbf16>
    %cst_8 = arith.constant dense<0.000000e+00> : vector<16x128xf32>
    %11 = tpu.matmul %9, %10, %cst_8 {dimension_numbers = #tpu.dot_dimension_numbers<[1], [0], [0], [1], [0, 0, 1, 1], [], []>} : vector<16x256xbf16>, vector<256x128xbf16>, vector<16x128xf32> -> vector<16x128xf32>
    %c0_9 = arith.constant 0 : index
    %c256 = arith.constant 256 : index
    %12 = vector.load %arg4[%c0_9, %c256] : memref<1x768xf32, #tpu.memory_space<vmem>>, vector<1x128xf32>
    %13 = vector.broadcast %12 : vector<1x128xf32> to vector<16x128xf32>
    %14 = arith.addf %11, %13 : vector<16x128xf32>
    %cst_10 = arith.constant 0.000000e+00 : f32
    %15 = vector.broadcast %cst_10 : f32 to vector<16x128xf32>
    %16 = arith.maximumf %14, %15 : vector<16x128xf32>
    %17 = arith.truncf %16 : vector<16x128xf32> to vector<16x128xbf16>
    %c256_11 = arith.constant 256 : index
    %c0_12 = arith.constant 0 : index
    %18 = vector.load %arg3[%c256_11, %c0_12] : memref<640x128xbf16, #tpu.memory_space<vmem>>, vector<128x128xbf16>
    %cst_13 = arith.constant dense<0.000000e+00> : vector<16x128xf32>
    %19 = tpu.matmul %17, %18, %cst_13 {dimension_numbers = #tpu.dot_dimension_numbers<[1], [0], [0], [1], [0, 0, 1, 1], [], []>} : vector<16x128xbf16>, vector<128x128xbf16>, vector<16x128xf32> -> vector<16x128xf32>
    %c0_14 = arith.constant 0 : index
    %c384 = arith.constant 384 : index
    %20 = vector.load %arg4[%c0_14, %c384] : memref<1x768xf32, #tpu.memory_space<vmem>>, vector<1x128xf32>
    %21 = vector.broadcast %20 : vector<1x128xf32> to vector<16x128xf32>
    %22 = arith.addf %19, %21 : vector<16x128xf32>
    %cst_15 = arith.constant 0.000000e+00 : f32
    %23 = vector.broadcast %cst_15 : f32 to vector<16x128xf32>
    %24 = arith.maximumf %22, %23 : vector<16x128xf32>
    %25 = arith.truncf %24 : vector<16x128xf32> to vector<16x128xbf16>
    %c384_16 = arith.constant 384 : index
    %c0_17 = arith.constant 0 : index
    %26 = vector.load %arg3[%c384_16, %c0_17] : memref<640x128xbf16, #tpu.memory_space<vmem>>, vector<128x128xbf16>
    %cst_18 = arith.constant dense<0.000000e+00> : vector<16x128xf32>
    %27 = tpu.matmul %25, %26, %cst_18 {dimension_numbers = #tpu.dot_dimension_numbers<[1], [0], [0], [1], [0, 0, 1, 1], [], []>} : vector<16x128xbf16>, vector<128x128xbf16>, vector<16x128xf32> -> vector<16x128xf32>
    %c0_19 = arith.constant 0 : index
    %c512 = arith.constant 512 : index
    %28 = vector.load %arg4[%c0_19, %c512] : memref<1x768xf32, #tpu.memory_space<vmem>>, vector<1x128xf32>
    %29 = vector.broadcast %28 : vector<1x128xf32> to vector<16x128xf32>
    %30 = arith.addf %27, %29 : vector<16x128xf32>
    %cst_20 = arith.constant 0.000000e+00 : f32
    %31 = vector.broadcast %cst_20 : f32 to vector<16x128xf32>
    %32 = arith.maximumf %30, %31 : vector<16x128xf32>
    %33 = arith.truncf %32 : vector<16x128xf32> to vector<16x128xbf16>
    %c512_21 = arith.constant 512 : index
    %c0_22 = arith.constant 0 : index
    %34 = vector.load %arg3[%c512_21, %c0_22] : memref<640x128xbf16, #tpu.memory_space<vmem>>, vector<128x128xbf16>
    %cst_23 = arith.constant dense<0.000000e+00> : vector<16x128xf32>
    %35 = tpu.matmul %33, %34, %cst_23 {dimension_numbers = #tpu.dot_dimension_numbers<[1], [0], [0], [1], [0, 0, 1, 1], [], []>} : vector<16x128xbf16>, vector<128x128xbf16>, vector<16x128xf32> -> vector<16x128xf32>
    %c0_24 = arith.constant 0 : index
    %c640 = arith.constant 640 : index
    %36 = vector.load %arg4[%c0_24, %c640] : memref<1x768xf32, #tpu.memory_space<vmem>>, vector<1x128xf32>
    %37 = vector.broadcast %36 : vector<1x128xf32> to vector<16x128xf32>
    %38 = arith.addf %35, %37 : vector<16x128xf32>
    %c0_25 = arith.constant 0 : index
    %c0_26 = arith.constant 0 : index
    %39 = vector.load %arg5[%c0_25, %c0_26] : memref<16x128xf32, #tpu.memory_space<vmem>>, vector<16x128xf32>
    tpu.vector_store %arg5[%c0_25, %c0_26], %38 {strides = array<i32>} : memref<16x128xf32, #tpu.memory_space<vmem>>, vector<16x128xf32>,
    return
  }
  func.func @transform_0(%arg0: i32) -> (i32, i32) {
    %c0_i32 = arith.constant 0 : i32
    %c0_i32_0 = arith.constant 0 : i32
    return %arg0, %c0_i32 : i32, i32
  }
  func.func @transform_1(%arg0: i32) -> (i32, i32) {
    %c0_i32 = arith.constant 0 : i32
    %c0_i32_0 = arith.constant 0 : i32
    %c0_i32_1 = arith.constant 0 : i32
    return %c0_i32, %c0_i32_0 : i32, i32
  }
  func.func @transform_2(%arg0: i32) -> (i32, i32) {
    %c0_i32 = arith.constant 0 : i32
    %c0_i32_0 = arith.constant 0 : i32
    %c0_i32_1 = arith.constant 0 : i32
    return %c0_i32, %c0_i32_0 : i32, i32
  }
  func.func @transform_3(%arg0: i32) -> (i32, i32) {
    %c0_i32 = arith.constant 0 : i32
    %c0_i32_0 = arith.constant 0 : i32
    %c0_i32_1 = arith.constant 0 : i32
    return %c0_i32, %c0_i32_0 : i32, i32
  }
  func.func @transform_4(%arg0: i32) -> (i32, i32) {
    %c0_i32 = arith.constant 0 : i32
    %c0_i32_0 = arith.constant 0 : i32
    return %arg0, %c0_i32 : i32, i32
  }
}

</mosaic_0001>

<bundles_post_ra>
// kernel: cat2vec_forward.1
= control target key start
LH: loop header
LB: loop body
LE: loop exit
PB: predicated region body
PF: predicated region fallthrough
CT: control target
= control target key end

     0   :  { %9 = vsyncpa [#allocation3], 0  ;;  %s2227_s0 = inlined_call_operand.vmem [shape: f32[2,768], index: 0, kind: input, shape index: {}]   ;;  %s2228_s1 = inlined_call_operand.hbm [shape: bf16[768,256], index: 1, kind: input, shape index: {}]   ;;  %s2229_s2 = inlined_call_operand.hbm [shape: bf16[640,128], index: 2, kind: input, shape index: {}]   ;;  %s2230_s3 = inlined_call_operand.vmem [shape: f32[1,768], index: 3, kind: input, shape index: {}]   ;;  %s2231_s4 = inlined_call_operand.hbm [shape: f32[2,128], index: 4, kind: output, shape index: {}]  }
   0x1   :  { %10 = vsyncpa [#allocation6], 0 }
   0x2   :  { %11 = vsyncpa [#allocation4], 0  ;;  %s18_s17 = sshll.u32 %s2228_s1, 4  ;;  %s2099_s18 = smov [#allocation2]   ;;  %s19_s17 = int_to_ptr.hbm [resolvable:$true] %s18_s17 }
   0x3   :  { %s20_s19 = sshll.u32 %s2099_s18, 4  ;;  %s31_s22 = sshll.u32 %s2229_s2, 4  ;;  %s21_s19 = int_to_ptr.vmem [resolvable:$true] %s20_s19  ;;  %s32_s22 = int_to_ptr.hbm [resolvable:$true] %s31_s22 }
   0x4   :  { %s2100_s23 = smov 128   ;;  %s2101_s24 = smov 8  }
   0x5   :  { %26 = dma.hbm_to_vmem [thread:$0]  %s19_s17, 12288, %s21_s19, [#allocation3], %s2100_s23, %s2100_s23, %s2101_s24  }
   0x6   :  { %s2102_s25 = smov [#allocation5]   ;;  %s2103_s27 = smov 64  }
   0x7   :  { %s33_s26 = sshll.u32 %s2102_s25, 4  ;;  %s2104_s28 = smov 4   ;;  %s34_s26 = int_to_ptr.vmem [resolvable:$true] %s33_s26 }
   0x8   :  { %39 = dma.hbm_to_vmem [thread:$0]  %s32_s22, 5120, %s34_s26, [#allocation6], %s2103_s27, %s2103_s27, %s2104_s28  }
   0x9   :  { %2093 = dma.done.wait [#allocation3], 12288  }
   0xa   :  { %2094 = vsyncadd [#allocation3], 4294955008 }
   0xb   :  { %2095 = dma.done.wait [#allocation6], 5120  }
   0xc   :  { %2096 = vsyncadd [#allocation6], 4294962176  ;;  %v1386_v0 = vld [vmem:[#allocation2 + $0x70] sm:$0xf]  ;;  %v1887_v1 = vld [vmem:[#allocation2 + $0x74] sm:$0xf0] }
   0xd   :  { %v1450_v2 = vld [vmem:[#allocation2 + $0xf0] sm:$0xf]  ;;  %v1387_v3 = vor.u32 %v1887_v1, %v1386_v0  ;;  %v1903_v4 = vld [vmem:[#allocation2 + $0xf4] sm:$0xf0]  ;;  %v1378_v11 = vld [vmem:[#allocation2 + $0x60] sm:$0xf] }
   0xe   :  { %v1514_v5 = vld [vmem:[#allocation2 + $0x170] sm:$0xf]  ;;  %v1919_v6 = vld [vmem:[#allocation2 + $0x174] sm:$0xf0]  ;;  %v1451_v7 = vor.u32 %v1903_v4, %v1450_v2  ;;  %v1885_v13 = vld [vmem:[#allocation2 + $0x64] sm:$0xf0] }
   0xf   :  { %v1515_v8 = vor.u32 %v1919_v6, %v1514_v5  ;;  %v1578_v9 = vld [vmem:[#allocation2 + $0x1f0] sm:$0xf]  ;;  %v1935_v10 = vld [vmem:[#allocation2 + $0x1f4] sm:$0xf0]  ;;  %717 = vmatpush.bf16.msra.mxu0 %v1387_v3  ;;  %v1442_v14 = vld [vmem:[#allocation2 + $0xe0] sm:$0xf]  ;;  %v1379_v16 = vor.u32 %v1885_v13, %v1378_v11 }
  0x10   :  { %v1579_v12 = vor.u32 %v1935_v10, %v1578_v9  ;;  %v1901_v15 = vld [vmem:[#allocation2 + $0xe4] sm:$0xf0]  ;;  %731 = vmatpush.bf16.msra.mxu1 %v1451_v7  ;;  %v1506_v18 = vld [vmem:[#allocation2 + $0x160] sm:$0xf]  ;;  %v1370_v23 = vld [vmem:[#allocation2 + $0x50] sm:$0xf] }
  0x11   :  { %745 = vmatpush.bf16.msra.mxu2 %v1515_v8  ;;  %v1443_v17 = vor.u32 %v1901_v15, %v1442_v14  ;;  %v1917_v19 = vld [vmem:[#allocation2 + $0x164] sm:$0xf0]  ;;  %v1570_v20 = vld [vmem:[#allocation2 + $0x1e0] sm:$0xf]  ;;  %v1883_v24 = vld [vmem:[#allocation2 + $0x54] sm:$0xf0] }
  0x12   :  { %759 = vmatpush.bf16.msra.mxu3 %v1579_v12  ;;  %v1507_v21 = vor.u32 %v1917_v19, %v1506_v18  ;;  %v1933_v22 = vld [vmem:[#allocation2 + $0x1e4] sm:$0xf0]  ;;  %v1434_v26 = vld [vmem:[#allocation2 + $0xd0] sm:$0xf]  ;;  %v1899_v27 = vld [vmem:[#allocation2 + $0xd4] sm:$0xf0]  ;;  %v1371_v29 = vor.u32 %v1883_v24, %v1370_v23 }
  0x13   :  { %v1571_v25 = vor.u32 %v1933_v22, %v1570_v20  ;;  %v1498_v28 = vld [vmem:[#allocation2 + $0x150] sm:$0xf]  ;;  %718 = vmatpush.bf16.msra.mxu0 %v1379_v16  ;;  %v1915_v30 = vld [vmem:[#allocation2 + $0x154] sm:$0xf0]  ;;  %v1435_v33 = vor.u32 %v1899_v27, %v1434_v26  ;;  %v1362_v35 = vld [vmem:[#allocation2 + $0x40] sm:$0xf] }
  0x14   :  { %v1562_v31 = vld [vmem:[#allocation2 + $0x1d0] sm:$0xf]  ;;  %v1931_v32 = vld [vmem:[#allocation2 + $0x1d4] sm:$0xf0]  ;;  %732 = vmatpush.bf16.msra.mxu1 %v1443_v17  ;;  %v1499_v34 = vor.u32 %v1915_v30, %v1498_v28  ;;  %v1881_v36 = vld [vmem:[#allocation2 + $0x44] sm:$0xf0] }
  0x15   :  { %746 = vmatpush.bf16.msra.mxu2 %v1507_v21  ;;  %v1426_v37 = vld [vmem:[#allocation2 + $0xc0] sm:$0xf]  ;;  %v1563_v38 = vor.u32 %v1931_v32, %v1562_v31  ;;  %v1897_v39 = vld [vmem:[#allocation2 + $0xc4] sm:$0xf0]  ;;  %v1363_v44 = vor.u32 %v1881_v36, %v1362_v35  ;;  %v1354_v47 = vld [vmem:[#allocation2 + $0x30] sm:$0xf] }
  0x16   :  { %760 = vmatpush.bf16.msra.mxu3 %v1571_v25  ;;  %v1490_v40 = vld [vmem:[#allocation2 + $0x140] sm:$0xf]  ;;  %v1913_v41 = vld [vmem:[#allocation2 + $0x144] sm:$0xf0]  ;;  %v1427_v45 = vor.u32 %v1897_v39, %v1426_v37  ;;  %v1879_v48 = vld [vmem:[#allocation2 + $0x34] sm:$0xf0] }
  0x17   :  { %v1554_v42 = vld [vmem:[#allocation2 + $0x1c0] sm:$0xf]  ;;  %v1929_v43 = vld [vmem:[#allocation2 + $0x1c4] sm:$0xf0]  ;;  %719 = vmatpush.bf16.msra.mxu0 %v1371_v29  ;;  %v1491_v46 = vor.u32 %v1913_v41, %v1490_v40  ;;  %v1418_v49 = vld [vmem:[#allocation2 + $0xb0] sm:$0xf]  ;;  %v1355_v56 = vor.u32 %v1879_v48, %v1354_v47 }
  0x18   :  { %733 = vmatpush.bf16.msra.mxu1 %v1435_v33  ;;  %v1555_v50 = vor.u32 %v1929_v43, %v1554_v42  ;;  %v1895_v51 = vld [vmem:[#allocation2 + $0xb4] sm:$0xf0]  ;;  %v1482_v52 = vld [vmem:[#allocation2 + $0x130] sm:$0xf]  ;;  %v1346_v59 = vld [vmem:[#allocation2 + $0x20] sm:$0xf] }
  0x19   :  { %747 = vmatpush.bf16.msra.mxu2 %v1499_v34  ;;  %v1911_v53 = vld [vmem:[#allocation2 + $0x134] sm:$0xf0]  ;;  %v1546_v54 = vld [vmem:[#allocation2 + $0x1b0] sm:$0xf]  ;;  %v1419_v57 = vor.u32 %v1895_v51, %v1418_v49  ;;  %v1877_v60 = vld [vmem:[#allocation2 + $0x24] sm:$0xf0] }
  0x1a   :  { %761 = vmatpush.bf16.msra.mxu3 %v1563_v38  ;;  %v1927_v55 = vld [vmem:[#allocation2 + $0x1b4] sm:$0xf0]  ;;  %v1483_v58 = vor.u32 %v1911_v53, %v1482_v52  ;;  %v1410_v61 = vld [vmem:[#allocation2 + $0xa0] sm:$0xf]  ;;  %v1893_v63 = vld [vmem:[#allocation2 + $0xa4] sm:$0xf0]  ;;  %v1347_v4 = vor.u32 %v1877_v60, %v1346_v59 }
  0x1b   :  { %720 = vmatpush.bf16.msra.mxu0 %v1363_v44  ;;  %v1547_v62 = vor.u32 %v1927_v55, %v1546_v54  ;;  %v1474_v0 = vld [vmem:[#allocation2 + $0x120] sm:$0xf]  ;;  %v1909_v1 = vld [vmem:[#allocation2 + $0x124] sm:$0xf0]  ;;  %v1411_v5 = vor.u32 %v1893_v63, %v1410_v61  ;;  %v1338_v7 = vld [vmem:[#allocation2 + $0x10] sm:$0xf] }
  0x1c   :  { %734 = vmatpush.bf16.msra.mxu1 %v1427_v45  ;;  %v1538_v2 = vld [vmem:[#allocation2 + $0x1a0] sm:$0xf]  ;;  %v1925_v3 = vld [vmem:[#allocation2 + $0x1a4] sm:$0xf0]  ;;  %v1475_v6 = vor.u32 %v1909_v1, %v1474_v0  ;;  %v1875_v8 = vld [vmem:[#allocation2 + $0x14] sm:$0xf0] }
  0x1d   :  { %748 = vmatpush.bf16.msra.mxu2 %v1491_v46  ;;  %v1402_v9 = vld [vmem:[#allocation2 + $0x90] sm:$0xf]  ;;  %v1539_v10 = vor.u32 %v1925_v3, %v1538_v2  ;;  %v1891_v11 = vld [vmem:[#allocation2 + $0x94] sm:$0xf0]  ;;  %v1339_v16 = vor.u32 %v1875_v8, %v1338_v7  ;;  %v1330_v17 = vld [vmem:[#allocation2] sm:$0xf] }
  0x1e   :  { %762 = vmatpush.bf16.msra.mxu3 %v1555_v50  ;;  %v1466_v12 = vld [vmem:[#allocation2 + $0x110] sm:$0xf]  ;;  %v1907_v13 = vld [vmem:[#allocation2 + $0x114] sm:$0xf0]  ;;  %v1873_v18 = vld [vmem:[#allocation2 + $0x4] sm:$0xf0]  ;;  %v1403_v19 = vor.u32 %v1891_v11, %v1402_v9 }
  0x1f   :  { %721 = vmatpush.bf16.msra.mxu0 %v1355_v56  ;;  %v1530_v14 = vld [vmem:[#allocation2 + $0x190] sm:$0xf]  ;;  %v1923_v15 = vld [vmem:[#allocation2 + $0x194] sm:$0xf0]  ;;  %v1467_v20 = vor.u32 %v1907_v13, %v1466_v12  ;;  %v1394_v21 = vld [vmem:[#allocation2 + $0x80] sm:$0xf]  ;;  %v1331_v31 = vor.u32 %v1873_v18, %v1330_v17 }
  0x20   :  { %735 = vmatpush.bf16.msra.mxu1 %v1419_v57  ;;  %v1889_v22 = vld [vmem:[#allocation2 + $0x84] sm:$0xf0]  ;;  %v1458_v23 = vld [vmem:[#allocation2 + $0x100] sm:$0xf]  ;;  %v1531_v24 = vor.u32 %v1923_v15, %v1530_v14  ;;  %v1642_v28 = vld [vmem:[#allocation2 + $0x270] sm:$0xf] }
  0x21   :  { %749 = vmatpush.bf16.msra.mxu2 %v1483_v58  ;;  %v1905_v25 = vld [vmem:[#allocation2 + $0x104] sm:$0xf0]  ;;  %v1522_v26 = vld [vmem:[#allocation2 + $0x180] sm:$0xf]  ;;  %v1951_v29 = vld [vmem:[#allocation2 + $0x274] sm:$0xf0]  ;;  %v1395_v35 = vor.u32 %v1889_v22, %v1394_v21 }
  0x22   :  { %763 = vmatpush.bf16.msra.mxu3 %v1547_v62  ;;  %v1921_v27 = vld [vmem:[#allocation2 + $0x184] sm:$0xf0]  ;;  %v1706_v30 = vld [vmem:[#allocation2 + $0x2f0] sm:$0xf]  ;;  %v1967_v32 = vld [vmem:[#allocation2 + $0x2f4] sm:$0xf0]  ;;  %v1459_v36 = vor.u32 %v1905_v25, %v1458_v23  ;;  %v1643_v40 = vor.u32 %v1951_v29, %v1642_v28 }
  0x23   :  { %722 = vmatpush.bf16.msra.mxu0 %v1347_v4  ;;  %v1886_v33 = vld [vmem:[#allocation2 + $0x74] sm:$0xf]  ;;  %v1388_v34 = vld [vmem:[#allocation2 + $0x78] sm:$0xf0]  ;;  %v1523_v39 = vor.u32 %v1921_v27, %v1522_v26  ;;  %v1634_v41 = vld [vmem:[#allocation2 + $0x260] sm:$0xf]  ;;  %v1707_v43 = vor.u32 %v1967_v32, %v1706_v30 }
  0x24   :  { %736 = vmatpush.bf16.msra.mxu1 %v1411_v5  ;;  %v1902_v37 = vld [vmem:[#allocation2 + $0xf4] sm:$0xf]  ;;  %v1452_v38 = vld [vmem:[#allocation2 + $0xf8] sm:$0xf0]  ;;  %v1949_v42 = vld [vmem:[#allocation2 + $0x264] sm:$0xf0]  ;;  %v1391_v44 = vor.u32 %v1886_v33, %v1388_v34 }
  0x25   :  { %750 = vmatpush.bf16.msra.mxu2 %v1475_v6  ;;  %v1698_v45 = vld [vmem:[#allocation2 + $0x2e0] sm:$0xf]  ;;  %v1965_v46 = vld [vmem:[#allocation2 + $0x2e4] sm:$0xf0]  ;;  %v1884_v47 = vld [vmem:[#allocation2 + $0x64] sm:$0xf]  ;;  %v1455_v48 = vor.u32 %v1902_v37, %v1452_v38  ;;  %v1635_v56 = vor.u32 %v1949_v42, %v1634_v41 }
  0x26   :  { %764 = vmatpush.bf16.msra.mxu3 %v1539_v10  ;;  %v1380_v49 = vld [vmem:[#allocation2 + $0x68] sm:$0xf0]  ;;  %v1900_v50 = vld [vmem:[#allocation2 + $0xe4] sm:$0xf]  ;;  %v1626_v52 = vld [vmem:[#allocation2 + $0x250] sm:$0xf]  ;;  %v1699_v59 = vor.u32 %v1965_v46, %v1698_v45 }
  0x27   :  { %723 = vmatpush.bf16.msra.mxu0 %v1339_v16  ;;  %v1444_v51 = vld [vmem:[#allocation2 + $0xe8] sm:$0xf0]  ;;  %v50_v53 = vld [vmem:[%s2227_s0] sm:$0xff]  ;;  %v52_v54 = vld [vmem:[%s2227_s0 + $0xc] sm:$0xff]  ;;  %v1383_v60 = vor.u32 %v1884_v47, %v1380_v49 }
  0x28   :  { %737 = vmatpush.bf16.msra.mxu1 %v1403_v19  ;;  %v54_v55 = vld [vmem:[%s2227_s0 + $0x18] sm:$0xff]  ;;  %v1947_v57 = vld [vmem:[#allocation2 + $0x254] sm:$0xf0]  ;;  %v56_v58 = vld [vmem:[%s2227_s0 + $0x24] sm:$0xff]  ;;  %82 = vst [vmem:[#allocation1] ss:$4 sm:$0xff] %v50_v53  ;;  %v1447_v63 = vor.u32 %v1900_v50, %v1444_v51 }
  0x29   :  { %751 = vmatpush.bf16.msra.mxu2 %v1467_v20  ;;  %v1690_v61 = vld [vmem:[#allocation2 + $0x2d0] sm:$0xf]  ;;  %v1963_v62 = vld [vmem:[#allocation2 + $0x2d4] sm:$0xf0]  ;;  %84 = vst [vmem:[#allocation1 + $0x1] ss:$4 sm:$0xff] %v52_v54  ;;  %v1627_v4 = vor.u32 %v1947_v57, %v1626_v52 }
  0x2a   :  { %765 = vmatpush.bf16.msra.mxu3 %v1531_v24  ;;  %v1882_v0 = vld [vmem:[#allocation2 + $0x54] sm:$0xf]  ;;  %v1372_v1 = vld [vmem:[#allocation2 + $0x58] sm:$0xf0]  ;;  %86 = vst [vmem:[#allocation1 + $0x2] ss:$4 sm:$0xff] %v54_v55  ;;  %v1691_v7 = vor.u32 %v1963_v62, %v1690_v61 }
  0x2b   :  { %724 = vmatpush.bf16.msra.mxu0 %v1331_v31  ;;  %v1898_v2 = vld [vmem:[#allocation2 + $0xd4] sm:$0xf]  ;;  %v1436_v3 = vld [vmem:[#allocation2 + $0xd8] sm:$0xf0]  ;;  %88 = vst [vmem:[#allocation1 + $0x3] ss:$4 sm:$0xff] %v56_v58  ;;  %v1375_v8 = vor.u32 %v1882_v0, %v1372_v1 }
  0x2c   :  { %738 = vmatpush.bf16.msra.mxu1 %v1395_v35  ;;  %v1618_v5 = vld [vmem:[#allocation2 + $0x240] sm:$0xf]  ;;  %v1945_v6 = vld [vmem:[#allocation2 + $0x244] sm:$0xf0]  ;;  %v1880_v11 = vld [vmem:[#allocation2 + $0x44] sm:$0xf]  ;;  %v1439_v12 = vor.u32 %v1898_v2, %v1436_v3 }
  0x2d   :  { %752 = vmatpush.bf16.msra.mxu2 %v1459_v36  ;;  %v1682_v9 = vld [vmem:[#allocation2 + $0x2c0] sm:$0xf]  ;;  %v1961_v10 = vld [vmem:[#allocation2 + $0x2c4] sm:$0xf0]  ;;  %v1364_v13 = vld [vmem:[#allocation2 + $0x48] sm:$0xf0]  ;;  %v1619_v19 = vor.u32 %v1945_v6, %v1618_v5 }
  0x2e   :  { %766 = vmatpush.bf16.msra.mxu3 %v1523_v39  ;;  %v1896_v14 = vld [vmem:[#allocation2 + $0xc4] sm:$0xf]  ;;  %v1428_v15 = vld [vmem:[#allocation2 + $0xc8] sm:$0xf0]  ;;  %v1610_v17 = vld [vmem:[#allocation2 + $0x230] sm:$0xf]  ;;  %v1683_v24 = vor.u32 %v1961_v10, %v1682_v9  ;;  %v1367_v25 = vor.u32 %v1880_v11, %v1364_v13 }
  0x2f   :  { %773 = vmatpush.bf16.msrb.mxu0 %v1643_v40  ;;  %v58_v16 = vld [vmem:[%s2227_s0 + $0x30] sm:$0xff]  ;;  %v1943_v18 = vld [vmem:[#allocation2 + $0x234] sm:$0xf0]  ;;  %v1674_v21 = vld [vmem:[#allocation2 + $0x2b0] sm:$0xf]  ;;  %v1431_v30 = vor.u32 %v1896_v14, %v1428_v15 }
  0x30   :  { %787 = vmatpush.bf16.msrb.mxu1 %v1707_v43  ;;  %v60_v20 = vld [vmem:[%s2227_s0 + $0x3c] sm:$0xff]  ;;  %v62_v26 = vld [vmem:[%s2227_s0 + $0x48] sm:$0xff]  ;;  %v1356_v27 = vld [vmem:[#allocation2 + $0x38] sm:$0xf0]  ;;  %v1611_v36 = vor.u32 %v1943_v18, %v1610_v17 }
  0x31   :  { %801 = vmatpush.bf16.msrb.mxu2 %v1391_v44  ;;  %v1959_v22 = vld [vmem:[#allocation2 + $0x2b4] sm:$0xf0]  ;;  %v1878_v23 = vld [vmem:[#allocation2 + $0x34] sm:$0xf]  ;;  %v1420_v29 = vld [vmem:[#allocation2 + $0xb8] sm:$0xf0] }
  0x32   :  { %815 = vmatpush.bf16.msrb.mxu3 %v1455_v48  ;;  %v1894_v28 = vld [vmem:[#allocation2 + $0xb4] sm:$0xf]  ;;  %v64_v31 = vld [vmem:[%s2227_s0 + $0x54] sm:$0xff]  ;;  %v97_v32 = vld.sshfl [vmem:[#allocation1] sm:$0xff pattern:$0x73625140]  ;;  %v1675_v39 = vor.u32 %v1959_v22, %v1674_v21  ;;  %v1359_v40 = vor.u32 %v1878_v23, %v1356_v27 }
  0x33   :  { %774 = vmatpush.bf16.msrb.mxu0 %v1635_v56  ;;  %v98_v33 = vld.sshfl [vmem:[#allocation1 + $0x8] sm:$0xff pattern:$0x73625140]  ;;  %v2163_v34 = vld.sshfl [vmem:[#allocation1 + $0x10] sm:$0xff pattern:$0x73625140]  ;;  %v1423_v43 = vor.u32 %v1894_v28, %v1420_v29 }
  0x34   :  { %788 = vmatpush.bf16.msrb.mxu1 %v1699_v59  ;;  %v2165_v35 = vld.sshfl [vmem:[#allocation1 + $0x18] sm:$0xff pattern:$0x73625140]  ;;  %v1602_v37 = vld [vmem:[#allocation2 + $0x220] sm:$0xf] }
  0x35   :  { %802 = vmatpush.bf16.msrb.mxu2 %v1383_v60  ;;  %103 = vst [vmem:[#allocation1] ss:$4 sm:$0xff] %v58_v16  ;;  %v1941_v38 = vld [vmem:[#allocation2 + $0x224] sm:$0xf0]  ;;  %v1666_v41 = vld [vmem:[#allocation2 + $0x2a0] sm:$0xf] }
  0x36   :  { %816 = vmatpush.bf16.msrb.mxu3 %v1447_v63  ;;  %104 = vst [vmem:[#allocation1 + $0x1] ss:$4 sm:$0xff] %v60_v20  ;;  %v1957_v42 = vld [vmem:[#allocation2 + $0x2a4] sm:$0xf0]  ;;  %v1876_v44 = vld [vmem:[#allocation2 + $0x24] sm:$0xf]  ;;  %v1603_v48 = vor.u32 %v1941_v38, %v1602_v37 }
  0x37   :  { %775 = vmatpush.bf16.msrb.mxu0 %v1627_v4  ;;  %105 = vst [vmem:[#allocation1 + $0x2] ss:$4 sm:$0xff] %v62_v26  ;;  %v1348_v45 = vld [vmem:[#allocation2 + $0x28] sm:$0xf0]  ;;  %v1892_v46 = vld [vmem:[#allocation2 + $0xa4] sm:$0xf]  ;;  %v1667_v50 = vor.u32 %v1957_v42, %v1666_v41 }
  0x38   :  { %789 = vmatpush.bf16.msrb.mxu1 %v1691_v7  ;;  %106 = vst [vmem:[#allocation1 + $0x3] ss:$4 sm:$0xff] %v64_v31  ;;  %v1412_v47 = vld [vmem:[#allocation2 + $0xa8] sm:$0xf0]  ;;  %v1594_v49 = vld [vmem:[#allocation2 + $0x210] sm:$0xf]  ;;  %v1351_v51 = vor.u32 %v1876_v44, %v1348_v45 }
  0x39   :  { %803 = vmatpush.bf16.msrb.mxu2 %v1375_v8  ;;  %v1939_v52 = vld [vmem:[#allocation2 + $0x214] sm:$0xf0]  ;;  %v1658_v53 = vld [vmem:[#allocation2 + $0x290] sm:$0xf]  ;;  %v1415_v55 = vor.u32 %v1892_v46, %v1412_v47  ;;  %v1874_v56 = vld [vmem:[#allocation2 + $0x14] sm:$0xf] }
  0x3a   :  { %817 = vmatpush.bf16.msrb.mxu3 %v1439_v12  ;;  %v1955_v54 = vld [vmem:[#allocation2 + $0x294] sm:$0xf0]  ;;  %v1340_v57 = vld [vmem:[#allocation2 + $0x18] sm:$0xf0]  ;;  %v1890_v58 = vld [vmem:[#allocation2 + $0x94] sm:$0xf]  ;;  %v1595_v63 = vor.u32 %v1939_v52, %v1594_v49 }
  0x3b   :  { %776 = vmatpush.bf16.msrb.mxu0 %v1619_v19  ;;  %v1404_v59 = vld [vmem:[#allocation2 + $0x98] sm:$0xf0]  ;;  %v1586_v60 = vld [vmem:[#allocation2 + $0x200] sm:$0xf]  ;;  %v1937_v61 = vld [vmem:[#allocation2 + $0x204] sm:$0xf0]  ;;  %v1659_v7 = vor.u32 %v1955_v54, %v1658_v53  ;;  %v1343_v16 = vor.u32 %v1874_v56, %v1340_v57 }
  0x3c   :  { %790 = vmatpush.bf16.msrb.mxu1 %v1683_v24  ;;  %v51_v62 = vld [vmem:[%s2227_s0 + $0x8] sm:$0xf]  ;;  %v1918_v0 = vld [vmem:[#allocation2 + $0x174] sm:$0xf]  ;;  %v1516_v1 = vld [vmem:[#allocation2 + $0x178] sm:$0xf0]  ;;  %v1407_v17 = vor.u32 %v1890_v58, %v1404_v59  ;;  %v1587_v22 = vor.u32 %v1937_v61, %v1586_v60 }
  0x3d   :  { %804 = vmatpush.bf16.msrb.mxu2 %v1367_v25  ;;  %v53_v2 = vld [vmem:[%s2227_s0 + $0x14] sm:$0xf]  ;;  %v55_v3 = vld [vmem:[%s2227_s0 + $0x20] sm:$0xf]  ;;  %v57_v4 = vld [vmem:[%s2227_s0 + $0x2c] sm:$0xf]  ;;  %v1519_v25 = vor.u32 %v1918_v0, %v1516_v1 }
  0x3e   :  { %818 = vmatpush.bf16.msrb.mxu3 %v1431_v30  ;;  %90 = vst [vmem:[#allocation1 + $0x20] ss:$4 sm:$0xff] %v51_v62  ;;  %v1650_v8 = vld [vmem:[#allocation2 + $0x280] sm:$0xf]  ;;  %v1953_v9 = vld [vmem:[#allocation2 + $0x284] sm:$0xf0] }
  0x3f   :  { %777 = vmatpush.bf16.msrb.mxu0 %v1611_v36  ;;  %v111_v5 = vld.sshfl [vmem:[#allocation1] sm:$0xff pattern:$0x73625140]  ;;  %v112_v6 = vld.sshfl [vmem:[#allocation1 + $0x8] sm:$0xff pattern:$0x73625140]  ;;  %v1651_v30 = vor.u32 %v1953_v9, %v1650_v8 }
  0x40   :  { %791 = vmatpush.bf16.msrb.mxu1 %v1675_v39  ;;  %v1872_v10 = vld [vmem:[#allocation2 + $0x4] sm:$0xf]  ;;  %v1332_v11 = vld [vmem:[#allocation2 + $0x8] sm:$0xf0]  ;;  %v2179_v12 = vpack.c.bf16 %v111_v5, %v97_v32  ;;  %v2181_v13 = vpack.c.bf16 %v112_v6, %v98_v33  ;;  %v1934_v23 = vld [vmem:[#allocation2 + $0x1f4] sm:$0xf] }
  0x41   :  { %805 = vmatpush.bf16.msrb.mxu2 %v1359_v40  ;;  %v113_v14 = vld.sshfl [vmem:[#allocation1 + $0x10] sm:$0xff pattern:$0x73625140]  ;;  %v114_v15 = vld.sshfl [vmem:[#allocation1 + $0x18] sm:$0xff pattern:$0x73625140]  ;;  %v1335_v31 = vor.u32 %v1872_v10, %v1332_v11 }
  0x42   :  { %819 = vmatpush.bf16.msrb.mxu3 %v1423_v43  ;;  %v1888_v18 = vld [vmem:[#allocation2 + $0x84] sm:$0xf]  ;;  %v1396_v19 = vld [vmem:[#allocation2 + $0x88] sm:$0xf0]  ;;  %v2184_v20 = vpack.c.bf16 %v113_v14, %v2163_v34  ;;  %v2187_v21 = vpack.c.bf16 %v114_v15, %v2165_v35  ;;  %v1580_v24 = vld [vmem:[#allocation2 + $0x1f8] sm:$0xf0]  ;;  %725 = vmatmul.bf16.vlgmr.msra.gmra.mxu0 %v2179_v12 }
  0x43   :  { %778 = vmatpush.bf16.msrb.mxu0 %v1603_v48  ;;  %92 = vst [vmem:[#allocation1 + $0x21] ss:$4 sm:$0xff] %v53_v2  ;;  %739 = vmatmul.bf16.vlgmr.msra.gmra.mxu1 %v2181_v13  ;;  %v1950_v26 = vld [vmem:[#allocation2 + $0x274] sm:$0xf]  ;;  %v1644_v27 = vld [vmem:[#allocation2 + $0x278] sm:$0xf0]  ;;  %v1399_v34 = vor.u32 %v1888_v18, %v1396_v19  ;;  %v1583_v35 = vor.u32 %v1934_v23, %v1580_v24 }
  0x44   :  { %792 = vmatpush.bf16.msrb.mxu1 %v1667_v50  ;;  %94 = vst [vmem:[#allocation1 + $0x22] ss:$4 sm:$0xff] %v55_v3  ;;  %753 = vmatmul.bf16.vlgmr.msra.gmra.mxu2 %v2184_v20  ;;  %v1966_v28 = vld [vmem:[#allocation2 + $0x2f4] sm:$0xf]  ;;  %v1708_v29 = vld [vmem:[#allocation2 + $0x2f8] sm:$0xf0]  ;;  %v1647_v36 = vor.u32 %v1950_v26, %v1644_v27 }
  0x45   :  { %806 = vmatpush.bf16.msrb.mxu2 %v1351_v51  ;;  %767 = vmatmul.bf16.vlgmr.msra.gmra.mxu3 %v2187_v21  ;;  %96 = vst [vmem:[#allocation1 + $0x23] ss:$4 sm:$0xff] %v57_v4  ;;  %v1916_v32 = vld [vmem:[#allocation2 + $0x164] sm:$0xf]  ;;  %v1508_v33 = vld [vmem:[#allocation2 + $0x168] sm:$0xf0]  ;;  %v1711_v37 = vor.u32 %v1966_v28, %v1708_v29 }
  0x46   :  { %820 = vmatpush.bf16.msrb.mxu3 %v1415_v55  ;;  %v59_v38 = vld [vmem:[%s2227_s0 + $0x38] sm:$0xf]  ;;  %v1932_v39 = vld [vmem:[#allocation2 + $0x1e4] sm:$0xf]  ;;  %v1572_v40 = vld [vmem:[#allocation2 + $0x1e8] sm:$0xf0]  ;;  %v1511_v43 = vor.u32 %v1916_v32, %v1508_v33 }
  0x47   :  { %779 = vmatpush.bf16.msrb.mxu0 %v1595_v63  ;;  %v1948_v41 = vld [vmem:[#allocation2 + $0x264] sm:$0xf]  ;;  %v61_v42 = vld [vmem:[%s2227_s0 + $0x44] sm:$0xf]  ;;  %v1636_v44 = vld [vmem:[#allocation2 + $0x268] sm:$0xf0]  ;;  %v1575_v52 = vor.u32 %v1932_v39, %v1572_v40 }
  0x48   :  { %793 = vmatpush.bf16.msrb.mxu1 %v1659_v7  ;;  %v1964_v45 = vld [vmem:[#allocation2 + $0x2e4] sm:$0xf]  ;;  %v1700_v46 = vld [vmem:[#allocation2 + $0x2e8] sm:$0xf0]  ;;  %v63_v47 = vld [vmem:[%s2227_s0 + $0x50] sm:$0xf]  ;;  %v1639_v58 = vor.u32 %v1948_v41, %v1636_v44 }
  0x49   :  { %807 = vmatpush.bf16.msrb.mxu2 %v1343_v16  ;;  %v1914_v48 = vld [vmem:[#allocation2 + $0x154] sm:$0xf]  ;;  %v1500_v49 = vld [vmem:[#allocation2 + $0x158] sm:$0xf0]  ;;  %v1703_v59 = vor.u32 %v1964_v45, %v1700_v46  ;;  %v1912_v63 = vld [vmem:[#allocation2 + $0x144] sm:$0xf] }
  0x4a   :  { %821 = vmatpush.bf16.msrb.mxu3 %v1407_v17  ;;  %v1930_v50 = vld [vmem:[#allocation2 + $0x1d4] sm:$0xf]  ;;  %v1564_v53 = vld [vmem:[#allocation2 + $0x1d8] sm:$0xf0]  ;;  %v1503_v60 = vor.u32 %v1914_v48, %v1500_v49  ;;  %v1492_v1 = vld [vmem:[#allocation2 + $0x148] sm:$0xf0] }
  0x4b   :  { %780 = vmatpush.bf16.msrb.mxu0 %v1587_v22  ;;  %v65_v51 = vld [vmem:[%s2227_s0 + $0x5c] sm:$0xf]  ;;  %v1628_v55 = vld [vmem:[#allocation2 + $0x258] sm:$0xf0]  ;;  %v1567_v0 = vor.u32 %v1930_v50, %v1564_v53  ;;  %v1928_v2 = vld [vmem:[#allocation2 + $0x1c4] sm:$0xf]  ;;  %v1495_v10 = vor.u32 %v1912_v63, %v1492_v1 }
  0x4c   :  { %794 = vmatpush.bf16.msrb.mxu1 %v1651_v30  ;;  %v1946_v54 = vld [vmem:[#allocation2 + $0x254] sm:$0xf]  ;;  %v101_v56 = vld.sshfl [vmem:[#allocation1 + $0x20] sm:$0xff pattern:$0x73625140] }
  0x4d   :  { %808 = vmatpush.bf16.msrb.mxu2 %v1335_v31  ;;  %v102_v57 = vld.sshfl [vmem:[#allocation1 + $0x28] sm:$0xff pattern:$0x73625140]  ;;  %v1962_v61 = vld [vmem:[#allocation2 + $0x2d4] sm:$0xf]  ;;  %v1631_v3 = vor.u32 %v1946_v54, %v1628_v55 }
  0x4e   :  { %822 = vmatpush.bf16.msrb.mxu3 %v1399_v34  ;;  %107 = vst [vmem:[#allocation1 + $0x20] ss:$4 sm:$0xff] %v59_v38  ;;  %v1692_v62 = vld [vmem:[#allocation2 + $0x2d8] sm:$0xf0]  ;;  %v1556_v5 = vld [vmem:[#allocation2 + $0x1c8] sm:$0xf0] }
  0x4f   :  { %829 = vmatpush.bf16.msra.mxu0 %v1519_v25  ;;  %108 = vst [vmem:[#allocation1 + $0x21] ss:$4 sm:$0xff] %v61_v42  ;;  %v1695_v4 = vor.u32 %v1962_v61, %v1692_v62  ;;  %v1944_v6 = vld [vmem:[#allocation2 + $0x244] sm:$0xf]  ;;  %v1620_v7 = vld [vmem:[#allocation2 + $0x248] sm:$0xf0]  ;;  %v1559_v11 = vor.u32 %v1928_v2, %v1556_v5 }
  0x50   :  { %843 = vmatpush.bf16.msra.mxu1 %v1583_v35  ;;  %109 = vst [vmem:[#allocation1 + $0x22] ss:$4 sm:$0xff] %v63_v47  ;;  %v1960_v8 = vld [vmem:[#allocation2 + $0x2c4] sm:$0xf]  ;;  %v1684_v9 = vld [vmem:[#allocation2 + $0x2c8] sm:$0xf0]  ;;  %v1623_v17 = vor.u32 %v1944_v6, %v1620_v7 }
  0x51   :  { %857 = vmatpush.bf16.msra.mxu2 %v1647_v36  ;;  %110 = vst [vmem:[#allocation1 + $0x23] ss:$4 sm:$0xff] %v65_v51  ;;  %v1910_v14 = vld [vmem:[#allocation2 + $0x134] sm:$0xf]  ;;  %v1484_v15 = vld [vmem:[#allocation2 + $0x138] sm:$0xf0]  ;;  %v1687_v18 = vor.u32 %v1960_v8, %v1684_v9 }
  0x52   :  { %871 = vmatpush.bf16.msra.mxu3 %v1711_v37  ;;  %v1926_v16 = vld [vmem:[#allocation2 + $0x1b4] sm:$0xf]  ;;  %v1548_v19 = vld [vmem:[#allocation2 + $0x1b8] sm:$0xf0]  ;;  %v1908_v26 = vld [vmem:[#allocation2 + $0x124] sm:$0xf]  ;;  %v1487_v30 = vor.u32 %v1910_v14, %v1484_v15 }
  0x53   :  { %830 = vmatpush.bf16.msra.mxu0 %v1511_v43  ;;  %v1942_v22 = vld [vmem:[#allocation2 + $0x234] sm:$0xf]  ;;  %v1612_v23 = vld [vmem:[#allocation2 + $0x238] sm:$0xf0]  ;;  %v1476_v27 = vld [vmem:[#allocation2 + $0x128] sm:$0xf0]  ;;  %v1551_v31 = vor.u32 %v1926_v16, %v1548_v19 }
  0x54   :  { %844 = vmatpush.bf16.msra.mxu1 %v1575_v52  ;;  %809 = vmatmul.bf16.vlgmr.msrb.gmra.mxu2 %v2179_v12  ;;  %v1958_v24 = vld [vmem:[#allocation2 + $0x2b4] sm:$0xf]  ;;  %v1676_v25 = vld [vmem:[#allocation2 + $0x2b8] sm:$0xf0]  ;;  %v1615_v32 = vor.u32 %v1942_v22, %v1612_v23  ;;  %v1924_v36 = vld [vmem:[#allocation2 + $0x1a4] sm:$0xf]  ;;  %v1479_v41 = vor.u32 %v1908_v26, %v1476_v27 }
  0x55   :  { %858 = vmatpush.bf16.msra.mxu2 %v1639_v58  ;;  %823 = vmatmul.bf16.vlgmr.msrb.gmra.mxu3 %v2181_v13  ;;  %v1679_v35 = vor.u32 %v1958_v24, %v1676_v25  ;;  %v1540_v12 = vld [vmem:[#allocation2 + $0x1a8] sm:$0xf0]  ;;  %v1940_v37 = vld [vmem:[#allocation2 + $0x224] sm:$0xf]  ;;  %v1906_v40 = vld [vmem:[#allocation2 + $0x114] sm:$0xf] }
  0x56   :  { %872 = vmatpush.bf16.msra.mxu3 %v1703_v59  ;;  %v1604_v13 = vld [vmem:[#allocation2 + $0x228] sm:$0xf0]  ;;  %v1956_v38 = vld [vmem:[#allocation2 + $0x2a4] sm:$0xf]  ;;  %v1543_v42 = vor.u32 %v1924_v36, %v1540_v12  ;;  %v1468_v43 = vld [vmem:[#allocation2 + $0x118] sm:$0xf0] }
  0x57   :  { %831 = vmatpush.bf16.msra.mxu0 %v1503_v60  ;;  %v1668_v39 = vld [vmem:[#allocation2 + $0x2a8] sm:$0xf0]  ;;  %v1607_v44 = vor.u32 %v1940_v37, %v1604_v13  ;;  %v1922_v46 = vld [vmem:[#allocation2 + $0x194] sm:$0xf]  ;;  %v1532_v47 = vld [vmem:[#allocation2 + $0x198] sm:$0xf0]  ;;  %v1471_v52 = vor.u32 %v1906_v40, %v1468_v43 }
  0x58   :  { %845 = vmatpush.bf16.msra.mxu1 %v1567_v0  ;;  %v115_v28 = vld.sshfl [vmem:[#allocation1 + $0x20] sm:$0xff pattern:$0x73625140]  ;;  %v116_v29 = vld.sshfl [vmem:[#allocation1 + $0x28] sm:$0xff pattern:$0x73625140]  ;;  %v1671_v45 = vor.u32 %v1956_v38, %v1668_v39  ;;  %v1535_v53 = vor.u32 %v1922_v46, %v1532_v47 }
  0x59   :  { %859 = vmatpush.bf16.msra.mxu2 %v1631_v3  ;;  %v133_v33 = vpack.c.bf16 %v115_v28, %v101_v56  ;;  %v134_v34 = vpack.c.bf16 %v116_v29, %v102_v57  ;;  %v1938_v48 = vld [vmem:[#allocation2 + $0x214] sm:$0xf]  ;;  %v1596_v49 = vld [vmem:[#allocation2 + $0x218] sm:$0xf0]  ;;  %v1904_v54 = vld [vmem:[#allocation2 + $0x104] sm:$0xf] }
  0x5a   :  { %873 = vmatpush.bf16.msra.mxu3 %v1695_v4  ;;  %v1954_v50 = vld [vmem:[#allocation2 + $0x294] sm:$0xf]  ;;  %v1660_v51 = vld [vmem:[#allocation2 + $0x298] sm:$0xf0]  ;;  %v1460_v55 = vld [vmem:[#allocation2 + $0x108] sm:$0xf0]  ;;  %v1599_v56 = vor.u32 %v1938_v48, %v1596_v49 }
  0x5b   :  { %832 = vmatpush.bf16.msra.mxu0 %v1495_v10  ;;  %795 = vmatmul.bf16.vlgmr.msrb.gmra.mxu1 %v134_v34  ;;  %v1663_v57 = vor.u32 %v1954_v50, %v1660_v51  ;;  %v1920_v58 = vld [vmem:[#allocation2 + $0x184] sm:$0xf]  ;;  %v1524_v59 = vld [vmem:[#allocation2 + $0x188] sm:$0xf0]  ;;  %v1463_v0 = vor.u32 %v1904_v54, %v1460_v55  ;;  %v1975_v4 = vld [vmem:[#allocation5 + $0x38] sm:$0xff] }
  0x5c   :  { %846 = vmatpush.bf16.msra.mxu1 %v1559_v11  ;;  %781 = vmatmul.bf16.vlgmr.msrb.gmra.mxu0 %v133_v33  ;;  %v1936_v60 = vld [vmem:[#allocation2 + $0x204] sm:$0xf]  ;;  %v1588_v61 = vld [vmem:[#allocation2 + $0x208] sm:$0xf0]  ;;  %v1527_v1 = vor.u32 %v1920_v58, %v1524_v59  ;;  %v1974_v5 = vld [vmem:[#allocation5 + $0x30] sm:$0xff] }
  0x5d   :  { %860 = vmatpush.bf16.msra.mxu2 %v1623_v17  ;;  %v1952_v62 = vld [vmem:[#allocation2 + $0x284] sm:$0xf]  ;;  %v1652_v63 = vld [vmem:[#allocation2 + $0x288] sm:$0xf0]  ;;  %v1591_v2 = vor.u32 %v1936_v60, %v1588_v61  ;;  %v1971_v8 = vld [vmem:[#allocation5 + $0x18] sm:$0xff] }
  0x5e   :  { %874 = vmatpush.bf16.msra.mxu3 %v1687_v18  ;;  %v1655_v3 = vor.u32 %v1952_v62, %v1652_v63  ;;  %v1973_v6 = vld [vmem:[#allocation5 + $0x28] sm:$0xff]  ;;  %v1972_v7 = vld [vmem:[#allocation5 + $0x20] sm:$0xff]  ;;  %v1970_v9 = vld [vmem:[#allocation5 + $0x10] sm:$0xff] }
  0x5f   :  { %833 = vmatpush.bf16.msra.mxu0 %v1487_v30  ;;  %v1969_v10 = vld [vmem:[#allocation5 + $0x8] sm:$0xff]  ;;  %v1968_v14 = vld [vmem:[#allocation5] sm:$0xff]  ;;  %v1983_v18 = vld [vmem:[#allocation5 + $0x78] sm:$0xff] }
  0x60   :  { %847 = vmatpush.bf16.msra.mxu1 %v1551_v31  ;;  %v1982_v22 = vld [vmem:[#allocation5 + $0x70] sm:$0xff]  ;;  %v1981_v26 = vld [vmem:[#allocation5 + $0x68] sm:$0xff]  ;;  %v1980_v31 = vld [vmem:[#allocation5 + $0x60] sm:$0xff] }
  0x61   :  { %861 = vmatpush.bf16.msra.mxu2 %v1615_v32  ;;  %v1978_v13 = vld [vmem:[#allocation5 + $0x50] sm:$0xff]  ;;  %v1976_v48 = vld [vmem:[#allocation5 + $0x40] sm:$0xff] }
  0x62   :  { %875 = vmatpush.bf16.msra.mxu3 %v1679_v35 }
  0x63   :  { %834 = vmatpush.bf16.msra.mxu0 %v1479_v41 }
  0x64   :  { %848 = vmatpush.bf16.msra.mxu1 %v1543_v42  ;;  %v1977_v42 = vld [vmem:[#allocation5 + $0x48] sm:$0xff] }
  0x65   :  { %862 = vmatpush.bf16.msra.mxu2 %v1607_v44 }
  0x66   :  { %876 = vmatpush.bf16.msra.mxu3 %v1671_v45 }
  0x67   :  { %835 = vmatpush.bf16.msra.mxu0 %v1471_v52 }
  0x68   :  { %849 = vmatpush.bf16.msra.mxu1 %v1535_v53 }
  0x69   :  { %863 = vmatpush.bf16.msra.mxu2 %v1599_v56 }
  0x6a   :  { %877 = vmatpush.bf16.msra.mxu3 %v1663_v57 }
  0x6b   :  { %836 = vmatpush.bf16.msra.mxu0 %v1463_v0 }
  0x6c   :  { %850 = vmatpush.bf16.msra.mxu1 %v1527_v1 }
  0x6d   :  { %864 = vmatpush.bf16.msra.mxu2 %v1591_v2 }
  0x6e   :  { %878 = vmatpush.bf16.msra.mxu3 %v1655_v3  ;;  %837 = vmatmul.bf16.vlgmr.msra.gmra.mxu0 %v2184_v20  ;;  %v231_v20 = vld [vmem:[%s2230_s3] sm:$0x3] }
  0x6f   :  { %851 = vmatmul.bf16.vlgmr.msra.gmra.mxu1 %v2187_v21  ;;  %1023 = vmatpush.bf16.msrb.mxu0 %v1975_v4  ;;  %v233_v15 = vperm.slane %v231_v20, 0  ;;  %v234_v49 = vperm.slane %v231_v20, 1 }
  0x70   :  { %865 = vmatmul.bf16.vlgmr.msra.gmra.mxu2 %v133_v33  ;;  %1037 = vmatpush.bf16.msrb.mxu1 %v1983_v18  ;;  %v1986_v18 = vld [vmem:[#allocation5 + $0x90] sm:$0xff] }
  0x71   :  { %879 = vmatmul.bf16.vlgmr.msra.gmra.mxu3 %v134_v34  ;;  %v1979_v34 = vld [vmem:[#allocation5 + $0x58] sm:$0xff] }
  0x73   :  { %1024 = vmatpush.bf16.msrb.mxu0 %v1974_v5 }
  0x74   :  { %1038 = vmatpush.bf16.msrb.mxu1 %v1982_v22  ;;  %v1984_v22 = vld [vmem:[#allocation5 + $0x80] sm:$0xff] }
  0x77   :  { %1025 = vmatpush.bf16.msrb.mxu0 %v1973_v6 }
  0x78   :  { %1039 = vmatpush.bf16.msrb.mxu1 %v1981_v26  ;;  %v1996_v26 = vld [vmem:[#allocation5 + $0xe0] sm:$0xff] }
  0x7b   :  { %1026 = vmatpush.bf16.msrb.mxu0 %v1972_v7 }
  0x7c   :  { %1040 = vmatpush.bf16.msrb.mxu1 %v1980_v31 }
  0x7f   :  { %1027 = vmatpush.bf16.msrb.mxu0 %v1971_v8 }
  0x80   :  { %1041 = vmatpush.bf16.msrb.mxu1 %v1979_v34 }
  0x83   :  { %1028 = vmatpush.bf16.msrb.mxu0 %v1970_v9 }
  0x84   :  { %1042 = vmatpush.bf16.msrb.mxu1 %v1978_v13  ;;  %v1995_v13 = vld [vmem:[#allocation5 + $0xd8] sm:$0xff] }
  0x87   :  { %1029 = vmatpush.bf16.msrb.mxu0 %v1969_v10 }
  0x88   :  { %1043 = vmatpush.bf16.msrb.mxu1 %v1977_v42  ;;  %v2006_v42 = vld [vmem:[#allocation5 + $0x130] sm:$0xff] }
  0x8b   :  { %1030 = vmatpush.bf16.msrb.mxu0 %v1968_v14  ;;  %v1990_v14 = vld [vmem:[#allocation5 + $0xb0] sm:$0xff] }
  0x8c   :  { %1044 = vmatpush.bf16.msrb.mxu1 %v1976_v48 }
  0xbf   :  { %v726_v21 = vpop.f32.mrf.mxu0 }
  0xc0   :  { %v740_v11 = vpop.f32.mrf.mxu1  ;;  %v727_v19 = vadd.f32 %v726_v21, %v233_v15 }
  0xc2   :  { %v741_v25 = vadd.f32 %v740_v11, %v727_v19  ;;  %v1991_v11 = vld [vmem:[#allocation5 + $0xb8] sm:$0xff]  ;;  %v1985_v19 = vld [vmem:[#allocation5 + $0x88] sm:$0xff] }
  0xc3   :  { %1122 = vmatpush.bf16.msrb.mxu2 %v1991_v11 }
  0xc7   :  { %v754_v16 = vpop.f32.mrf.mxu2  ;;  %v728_v23 = vpop.f32.mrf.mxu0  ;;  %1123 = vmatpush.bf16.msrb.mxu2 %v1990_v14 }
  0xc8   :  { %v768_v17 = vpop.f32.mrf.mxu3  ;;  %v742_v24 = vpop.f32.mrf.mxu1  ;;  %v729_v27 = vadd.f32 %v728_v23, %v233_v15  ;;  %v755_v28 = vadd.f32 %v754_v16, %v741_v25  ;;  %v1989_v15 = vld [vmem:[#allocation5 + $0xa8] sm:$0xff]  ;;  %v1988_v16 = vld [vmem:[#allocation5 + $0xa0] sm:$0xff]  ;;  %v1999_v23 = vld [vmem:[#allocation5 + $0xf8] sm:$0xff] }
  0xc9   :  { %1207 = vmatpush.bf16.msrb.mxu3 %v1999_v23  ;;  %v1997_v25 = vld [vmem:[#allocation5 + $0xe8] sm:$0xff] }
  0xca   :  { %v743_v32 = vadd.f32 %v742_v24, %v729_v27  ;;  %v769_v33 = vadd.f32 %v768_v17, %v755_v28  ;;  %v1987_v17 = vld [vmem:[#allocation5 + $0x98] sm:$0xff]  ;;  %v1998_v24 = vld [vmem:[#allocation5 + $0xf0] sm:$0xff] }
  0xcb   :  { %1124 = vmatpush.bf16.msrb.mxu2 %v1989_v15 }
  0xcd   :  { %1208 = vmatpush.bf16.msrb.mxu3 %v1998_v24 }
  0xcf   :  { %v756_v29 = vpop.f32.mrf.mxu2  ;;  %1125 = vmatpush.bf16.msrb.mxu2 %v1988_v16 }
  0xd0   :  { %v770_v30 = vpop.f32.mrf.mxu3  ;;  %v757_v12 = vadd.f32 %v756_v29, %v743_v32  ;;  %v2017_v29 = vld [vmem:[%s2230_s3 + $0x2] ss:$0 sm:$0xff] }
  0xd1   :  { %1209 = vmatpush.bf16.msrb.mxu3 %v1997_v25 }
  0xd2   :  { %v771_v38 = vadd.f32 %v770_v30, %v757_v12 }
  0xd3   :  { %1126 = vmatpush.bf16.msrb.mxu2 %v1987_v17 }
  0xd5   :  { %1210 = vmatpush.bf16.msrb.mxu3 %v1996_v26 }
  0xd7   :  { %v810_v39 = vpop.f32.mrf.mxu2  ;;  %1127 = vmatpush.bf16.msrb.mxu2 %v1986_v18 }
  0xd8   :  { %v796_v36 = vpop.f32.mrf.mxu1  ;;  %v824_v40 = vpop.f32.mrf.mxu3  ;;  %v811_v54 = vadd.f32 %v810_v39, %v234_v49  ;;  %v1993_v39 = vld [vmem:[#allocation5 + $0xc8] sm:$0xff] }
  0xd9   :  { %v782_v35 = vpop.f32.mrf.mxu0  ;;  %1211 = vmatpush.bf16.msrb.mxu3 %v1995_v13 }
  0xda   :  { %v783_v37 = vadd.f32 %v782_v35, %v769_v33  ;;  %v825_v57 = vadd.f32 %v824_v40, %v811_v54  ;;  %v1992_v40 = vld [vmem:[#allocation5 + $0xc0] sm:$0xff]  ;;  %v2002_v54 = vld [vmem:[#allocation5 + $0x110] sm:$0xff] }
  0xdb   :  { %1128 = vmatpush.bf16.msrb.mxu2 %v1985_v19 }
  0xdc   :  { %v797_v41 = vadd.f32 %v796_v36, %v783_v37 }
  0xde   :  { %v885_v46 = vmax.f32 %v797_v41, 0.0  ;;  %v2007_v41 = vld [vmem:[#allocation5 + $0x138] sm:$0xff] }
  0xdf   :  { %v812_v52 = vpop.f32.mrf.mxu2  ;;  %1129 = vmatpush.bf16.msrb.mxu2 %v1984_v22  ;;  %1292 = vmatpush.bf16.msra.mxu0 %v2007_v41 }
  0xe0   :  { %v798_v44 = vpop.f32.mrf.mxu1  ;;  %v826_v53 = vpop.f32.mrf.mxu3  ;;  %v813_v58 = vadd.f32 %v812_v52, %v234_v49 }
  0xe1   :  { %v784_v43 = vpop.f32.mrf.mxu0 }
  0xe2   :  { %v785_v45 = vadd.f32 %v784_v43, %v771_v38  ;;  %v827_v62 = vadd.f32 %v826_v53, %v813_v58  ;;  %v1994_v38 = vld [vmem:[#allocation5 + $0xd0] sm:$0xff]  ;;  %v2005_v43 = vld [vmem:[#allocation5 + $0x128] sm:$0xff]  ;;  %v2003_v53 = vld [vmem:[#allocation5 + $0x118] sm:$0xff] }
  0xe3   :  { %1212 = vmatpush.bf16.msrb.mxu3 %v1994_v38  ;;  %1293 = vmatpush.bf16.msra.mxu0 %v2006_v42  ;;  %v2019_v58 = vld [vmem:[%s2230_s3 + $0x4] ss:$0 sm:$0xff] }
  0xe4   :  { %v799_v47 = vadd.f32 %v798_v44, %v785_v45  ;;  %v2004_v44 = vld [vmem:[#allocation5 + $0x120] sm:$0xff] }
  0xe6   :  { %v887_v50 = vmax.f32 %v799_v47, 0.0 }
  0xe7   :  { %1213 = vmatpush.bf16.msrb.mxu3 %v1993_v39  ;;  %1294 = vmatpush.bf16.msra.mxu0 %v2005_v43 }
  0xe8   :  { %v889_v51 = vpack.c.bf16 %v887_v50, %v885_v46  ;;  %v2018_v46 = vld [vmem:[%s2230_s3 + $0x3] ss:$0 sm:$0xff] }
  0xea   :  { %1031 = vmatmul.bf16.vlgmr.msrb.gmra.mxu0 %v889_v51 }
  0xeb   :  { %v838_v55 = vpop.f32.mrf.mxu0  ;;  %1214 = vmatpush.bf16.msrb.mxu3 %v1992_v40  ;;  %1295 = vmatpush.bf16.msra.mxu0 %v2004_v44 }
  0xec   :  { %v852_v56 = vpop.f32.mrf.mxu1  ;;  %v839_v59 = vadd.f32 %v838_v55, %v825_v57  ;;  %v2001_v55 = vld [vmem:[#allocation5 + $0x108] sm:$0xff] }
  0xee   :  { %v853_v0 = vadd.f32 %v852_v56, %v839_v59  ;;  %v2000_v56 = vld [vmem:[#allocation5 + $0x100] sm:$0xff] }
  0xef   :  { %1296 = vmatpush.bf16.msra.mxu0 %v2003_v53 }
  0xf3   :  { %v866_v60 = vpop.f32.mrf.mxu2  ;;  %v840_v63 = vpop.f32.mrf.mxu0  ;;  %1297 = vmatpush.bf16.msra.mxu0 %v2002_v54 }
  0xf4   :  { %v880_v61 = vpop.f32.mrf.mxu3  ;;  %v841_v1 = vadd.f32 %v840_v63, %v827_v62  ;;  %v867_v2 = vadd.f32 %v866_v60, %v853_v0  ;;  %v854_v3 = vpop.f32.mrf.mxu1 }
  0xf6   :  { %v855_v4 = vadd.f32 %v854_v3, %v841_v1  ;;  %v881_v6 = vadd.f32 %v880_v61, %v867_v2  ;;  %v2020_v1 = vld [vmem:[%s2230_s3 + $0x5] ss:$0 sm:$0xff] }
  0xf7   :  { %1298 = vmatpush.bf16.msra.mxu0 %v2001_v55 }
  0xf8   :  { %v886_v10 = vmax.f32 %v881_v6, 0.0 }
  0xfb   :  { %v868_v5 = vpop.f32.mrf.mxu2  ;;  %1299 = vmatpush.bf16.msra.mxu0 %v2000_v56 }
  0xfc   :  { %v869_v7 = vadd.f32 %v868_v5, %v855_v4  ;;  %v882_v8 = vpop.f32.mrf.mxu3 }
  0xfe   :  { %v883_v9 = vadd.f32 %v882_v8, %v869_v7 }
 0x100   :  { %v888_v20 = vmax.f32 %v883_v9, 0.0 }
 0x102   :  { %v890_v21 = vpack.c.bf16 %v888_v20, %v886_v10 }
 0x104   :  { %1045 = vmatmul.bf16.vlgmr.msrb.gmra.mxu1 %v890_v21 }
 0x167   :  { %v1032_v27 = vpop.f32.mrf.mxu0 }
 0x168   :  { %v1033_v31 = vadd.f32 %v2017_v29, %v1032_v27 }
 0x16f   :  { %v1034_v30 = vpop.f32.mrf.mxu0 }
 0x170   :  { %v1035_v32 = vadd.f32 %v2017_v29, %v1034_v30 }
 0x181   :  { %v1046_v28 = vpop.f32.mrf.mxu1 }
 0x182   :  { %v1047_v33 = vadd.f32 %v1046_v28, %v1033_v31 }
 0x184   :  { %v1051_v36 = vmax.f32 %v1047_v33, 0.0 }
 0x189   :  { %v1048_v34 = vpop.f32.mrf.mxu1 }
 0x18a   :  { %v1049_v35 = vadd.f32 %v1048_v34, %v1035_v32 }
 0x18c   :  { %v1052_v12 = vmax.f32 %v1049_v35, 0.0 }
 0x18e   :  { %v1053_v37 = vpack.c.bf16 %v1052_v12, %v1051_v36 }
 0x190   :  { %1130 = vmatmul.bf16.vlgmr.msrb.gmra.mxu2 %v1053_v37 }
 0x213   :  { %v1131_v45 = vpop.f32.mrf.mxu2 }
 0x214   :  { %v1132_v47 = vadd.f32 %v2018_v46, %v1131_v45 }
 0x216   :  { %v1136_v50 = vmax.f32 %v1132_v47, 0.0 }
 0x21b   :  { %v1133_v48 = vpop.f32.mrf.mxu2 }
 0x21c   :  { %v1134_v49 = vadd.f32 %v2018_v46, %v1133_v48 }
 0x21e   :  { %v1137_v51 = vmax.f32 %v1134_v49, 0.0 }
 0x220   :  { %v1138_v52 = vpack.c.bf16 %v1137_v51, %v1136_v50 }
 0x222   :  { %1215 = vmatmul.bf16.vlgmr.msrb.gmra.mxu3 %v1138_v52 }
 0x2a5   :  { %v1216_v57 = vpop.f32.mrf.mxu3 }
 0x2a6   :  { %v1217_v59 = vadd.f32 %v2019_v58, %v1216_v57 }
 0x2a8   :  { %v1221_v62 = vmax.f32 %v1217_v59, 0.0 }
 0x2ad   :  { %v1218_v60 = vpop.f32.mrf.mxu3 }
 0x2ae   :  { %v1219_v61 = vadd.f32 %v2019_v58, %v1218_v60 }
 0x2b0   :  { %v1222_v63 = vmax.f32 %v1219_v61, 0.0 }
 0x2b2   :  { %v1223_v0 = vpack.c.bf16 %v1222_v63, %v1221_v62 }
 0x2b4   :  { %1300 = vmatmul.bf16.vlgmr.msra.gmra.mxu0 %v1223_v0 }
 0x331   :  { %v1301_v2 = vpop.f32.mrf.mxu0 }
 0x332   :  { %v1302_v3 = vadd.f32 %v2020_v1, %v1301_v2 }
 0x334   :  { %1306 = vst [vmem:[#allocation7] sm:$0xff] %v1302_v3 }
 0x339   :  { %v1303_v4 = vpop.f32.mrf.mxu0 }
 0x33a   :  { %v1304_v5 = vadd.f32 %v2020_v1, %v1303_v4 }
 0x33c   :  { %1307 = vst [vmem:[#allocation7 + $0x8] sm:$0xff] %v1304_v5 }
 0x33d   :  { %1311 = vsyncadd [#allocation4], 224  ;;  %s1314_s16 = sshll.u32 %s2231_s4, 4  ;;  %s2105_s17 = smov [#allocation7]   ;;  %s1315_s16 = int_to_ptr.hbm [resolvable:$true] %s1314_s16 }
 0x33e   :  { %s1312_s18 = sshll.u32 %s2105_s17, 4  ;;  %s2106_s19 = smov 32   ;;  %s1313_s18 = int_to_ptr.vmem [resolvable:$true] %s1312_s18 }
 0x33f   :  { %s2107_s20 = smov 2  }
 0x340   :  { %1320 = dma.vmem_to_hbm [thread:$0]  %s1313_s18, 32, %s1315_s16, [#allocation4], %s2106_s19, %s2106_s19, %s2107_s20  }
 0x341   :  { %2097 = dma.done.wait [#allocation4], 256  }
 0x342   :  { %2098 = vsyncadd [#allocation4], 4294967040 }
 0x343   :  { %1325 = vsyncpa [#allocation3], 1 }
 0x344   :  { %1326 = vsyncpa [#allocation6], 1 }
 0x345   :  { %1327 = vsyncpa [#allocation4], 1 }

</bundles_post_ra>
